<compile_context>
chip_gen: v5e
topology: v5e:2x2
jax: 0.10.0
libtpu: 0.0.40
codegen_flags: <defaults>
</compile_context>

<pallas_src>
import functools

import jax
import jax.numpy as jnp
from jax.experimental import pallas as pl
from jax.experimental.pallas import tpu as pltpu

H1 = 400          # layer-1 width (PyTorch)
H2 = 300          # layer-2 width (PyTorch)
H1_PAD = 512      # 400 padded to a lane multiple
H2_PAD = 384      # 300 padded to a lane multiple
ACT_PAD = 128     # action lanes padded for a lane-dense output store


def _round_up(x, m):
    return (x + m - 1) // m * m


def _cdiv(a, b):
    return -(-a // b)


def _tpu_num_tensorcores():
    """2 TensorCores per chip on v7x, 1 on v5e/v6e.  Safe fallback: 1."""
    try:
        kind = jax.devices()[0].device_kind.lower()
    except Exception:
        return 1
    return 2 if "v7" in kind else 1


def _choose_batch_tiling(B, tile_b, num_cores):
    """Return (tb, b_pad): batch tile (grid step) and padded batch size."""
    n_steps = _cdiv(B, tile_b)
    # v7x: make sure both TensorCores get a slice of the batch.
    if num_cores > 1 and n_steps < num_cores and B >= 16 * num_cores:
        n_steps = num_cores
    if n_steps == 1:
        # Single grid step: block dims equal the full array dims -> no padding,
        # no wrapper-side copies at all.
        return B, B
    tb = _round_up(_cdiv(B, n_steps), 16)   # multiple of 16 (bf16 sublane pack)
    n_steps = _cdiv(B, tb)                  # rounding may reduce the step count
    return tb, tb * n_steps


def actor_mlp_kernel(obs_ref, w_ref, b_ref, out_ref, *, obs_dim):
    """Fused tanh(relu(relu(x@W1+b1)@W2+b2)@W3+b3) on one batch tile.

    w_ref packs the three zero-padded bf16 weight matrices (obs_p = round_up(obs_dim,16)):
      rows [0, obs_dim)         cols [0, 512)   : W1  (obs_dim, 512)
      rows [obs_p, obs_p+512)   cols [0, 384)   : W2  (512, 384)
      rows [obs_p, obs_p+384)   cols [384, 512) : W3  (384, 128)
    b_ref rows 0/1/2 hold b1/b2/b3 (f32, zero padded along lanes).
    W2/W3 slice boundaries are (sublane, lane)-tile aligned; the W1 row slice is
    tiny (obs_dim rows) so its sub-tile layout cost is negligible.
    """
    obs_p = _round_up(obs_dim, 16)
    x = obs_ref[...].astype(jnp.bfloat16)                        # (TB, obs_dim)

    # Layer 1: Linear(obs_dim, 400) + ReLU  (computed at padded width 512)
    w1 = w_ref[0:obs_dim, :]                                     # (obs_dim, 512) bf16
    h = jnp.dot(x, w1, preferred_element_type=jnp.float32)
    h = jnp.maximum(h + b_ref[0:1, :], 0.0)                      # (TB, 512) f32

    # Layer 2: Linear(400, 300) + ReLU  (padded width 384)
    w2 = w_ref[obs_p:obs_p + H1_PAD, 0:H2_PAD]                   # (512, 384) bf16
    h = jnp.dot(h.astype(jnp.bfloat16), w2,
                preferred_element_type=jnp.float32)
    h = jnp.maximum(h + b_ref[1:2, 0:H2_PAD], 0.0)               # (TB, 384) f32

    # Layer 3: Linear(300, action_dim) + tanh  (padded width 128)
    w3 = w_ref[obs_p:obs_p + H2_PAD, H2_PAD:H2_PAD + ACT_PAD]    # (384, 128) bf16
    y = jnp.dot(h.astype(jnp.bfloat16), w3,
                preferred_element_type=jnp.float32)
    out_ref[...] = jnp.tanh(y + b_ref[2:3, 0:ACT_PAD]).astype(out_ref.dtype)


def pack_actor_params(params, obs_dim, action_dim):
    """Pack (w1,b1,w2,b2,w3,b3) into one bf16 weight blob + one f32 bias block."""
    w1, b1, w2, b2, w3, b3 = params
    assert w1.shape == (obs_dim, H1) and w2.shape == (H1, H2)
    assert w3.shape == (H2, action_dim) and action_dim <= ACT_PAD

    obs_p = _round_up(obs_dim, 16)   # bf16 sublane-tile aligned row offset for W2/W3
    w_blob = jnp.zeros((obs_p + H1_PAD, H1_PAD), jnp.bfloat16)
    w_blob = w_blob.at[:obs_dim, :H1].set(w1.astype(jnp.bfloat16))
    w_blob = w_blob.at[obs_p:obs_p + H1, :H2].set(w2.astype(jnp.bfloat16))
    w_blob = w_blob.at[obs_p:obs_p + H2,
                       H2_PAD:H2_PAD + action_dim].set(w3.astype(jnp.bfloat16))

    b_blob = jnp.zeros((8, H1_PAD), jnp.float32)
    b_blob = b_blob.at[0, :H1].set(b1)
    b_blob = b_blob.at[1, :H2].set(b2)
    b_blob = b_blob.at[2, :action_dim].set(b3)
    return w_blob, b_blob


def actor_forward(obs, packed_params, action_dim, *, tile_b=256,
                  out_dtype=jnp.float32):
    """Fused actor MLP.  obs: (B, obs_dim) f32 -> (B, action_dim) out_dtype."""
    w_blob, b_blob = packed_params
    B, obs_dim = obs.shape
    assert action_dim <= ACT_PAD

    tb, b_pad = _choose_batch_tiling(B, tile_b, _tpu_num_tensorcores())
    obs = obs.astype(jnp.float32)
    if b_pad != B:
        # Only materialized when B is not a tile multiple (never column-padded).
        obs = jnp.pad(obs, ((0, b_pad - B), (0, 0)))

    cost = pl.CostEstimate(
        flops=2 * b_pad * (obs_dim * H1_PAD + H1_PAD * H2_PAD + H2_PAD * ACT_PAD),
        transcendentals=b_pad * ACT_PAD,
        bytes_accessed=(w_blob.size * w_blob.dtype.itemsize
                        + b_blob.size * b_blob.dtype.itemsize
                        + b_pad * obs_dim * 4
                        + b_pad * ACT_PAD * jnp.dtype(out_dtype).itemsize),
    )

    kernel = functools.partial(actor_mlp_kernel, obs_dim=obs_dim)
    out = pl.pallas_call(
        kernel,
        out_shape=jax.ShapeDtypeStruct((b_pad, ACT_PAD), out_dtype),
        grid=(b_pad // tb,),
        in_specs=[
            pl.BlockSpec((tb, obs_dim), lambda i: (i, 0)),   # obs tile (pipelined)
            pl.BlockSpec(w_blob.shape, lambda i: (0, 0)),    # resident weight blob
            pl.BlockSpec(b_blob.shape, lambda i: (0, 0)),    # resident bias block
        ],
        out_specs=pl.BlockSpec((tb, ACT_PAD), lambda i: (i, 0)),
        compiler_params=pltpu.CompilerParams(
            dimension_semantics=("parallel",)),              # shards batch across TCs
        cost_estimate=cost,
    )(obs, w_blob, b_blob)
    # Consumers that can take the padded (b_pad, 128) slab should skip this slice.
    return out[:B, :action_dim]


def init_actor_params(key, obs_dim, action_dim):
    """PyTorch nn.Linear default init: U[-1/sqrt(fan_in), 1/sqrt(fan_in)].
    Weights stored as (in_features, out_features); biases as (out_features,)."""
    def linear_init(k, fan_in, fan_out):
        kw, kb = jax.random.split(k)
        bound = 1.0 / jnp.sqrt(jnp.float32(fan_in))
        w = jax.random.uniform(kw, (fan_in, fan_out), jnp.float32, -bound, bound)
        b = jax.random.uniform(kb, (fan_out,), jnp.float32, -bound, bound)
        return w, b

    k1, k2, k3 = jax.random.split(key, 3)
    w1, b1 = linear_init(k1, obs_dim, H1)
    w2, b2 = linear_init(k2, H1, H2)
    w3, b3 = linear_init(k3, H2, action_dim)
    return (w1, b1, w2, b2, w3, b3)


def actor_reference(obs, params):
    """Pure-JAX reference matching the kernel numerics (bf16 MXU operands, f32 accum).
    NOTE: vs the exact f32 PyTorch Actor the bf16 operand rounding gives ~1e-2
    worst-case pre-tanh drift — acceptable for TD3 policies."""
    w1, b1, w2, b2, w3, b3 = params

    def mm(x, w):
        return jnp.dot(x.astype(jnp.bfloat16), w.astype(jnp.bfloat16),
                       preferred_element_type=jnp.float32)

    h1 = jnp.maximum(mm(obs, w1) + b1, 0.0)
    h2 = jnp.maximum(mm(h1, w2) + b2, 0.0)
    return jnp.tanh(mm(h2, w3) + b3)


if __name__ == "__main__":
    key = jax.random.PRNGKey(0)
    k_params, k_obs1, k_obs2 = jax.random.split(key, 3)

    # Deliberately unaligned small shapes to exercise padding/packing paths.
    obs_dim, action_dim = 11, 3
    params = init_actor_params(k_params, obs_dim, action_dim)
    packed = pack_actor_params(params, obs_dim, action_dim)

    fwd = jax.jit(actor_forward,
                  static_argnames=("action_dim", "tile_b", "out_dtype"))

    # 1) Tiny unaligned batch: grid=(1,), zero wrapper-side padding, f32 output.
    obs_small = jax.random.normal(k_obs1, (6, obs_dim), jnp.float32)
    out_small = jax.block_until_ready(fwd(obs_small, packed, action_dim=action_dim))
    ref_small = actor_reference(obs_small, params)
    assert out_small.shape == (6, action_dim), out_small.shape
    err = float(jnp.max(jnp.abs(out_small - ref_small)))
    assert jnp.allclose(out_small, ref_small, atol=5e-3, rtol=5e-3), f"mismatch: {err}"

    # 2) Larger batch forced through the multi-tile grid path (tile_b=16 ->
    #    grid=(3,), row padding 40->48) with a bf16 output store.
    obs_big = jax.random.normal(k_obs2, (40, obs_dim), jnp.float32)
    out_big = jax.block_until_ready(
        fwd(obs_big, packed, action_dim=action_dim, tile_b=16,
            out_dtype=jnp.bfloat16))
    ref_big = actor_reference(obs_big, params)
    assert out_big.shape == (40, action_dim) and out_big.dtype == jnp.bfloat16
    err_big = float(jnp.max(jnp.abs(out_big.astype(jnp.float32) - ref_big)))
    assert jnp.allclose(out_big.astype(jnp.float32), ref_big,
                        atol=1e-2, rtol=1e-2), f"mismatch: {err_big}"

    print("KERNEL_OK")
</pallas_src>

<mosaic_0001>
module attributes {stable_mosaic.version = 11 : i64} {
  func.func @actor_mlp_kernel(%arg0: i32, %arg1: memref<6x11xf32, #tpu.memory_space<vmem>>, %arg2: memref<528x512xbf16, #tpu.memory_space<vmem>>, %arg3: memref<8x512xf32, #tpu.memory_space<vmem>>, %arg4: memref<6x128xf32, #tpu.memory_space<vmem>>) attributes {dimension_semantics = [#tpu.dimension_semantics<parallel>], iteration_bounds = array<i64: 1>, scalar_prefetch = 0 : i64, scratch_operands = 0 : i64, tpu.core_type = #tpu.core_type<tc>, window_params = [{transform_indices = @transform_0, window_bounds = array<i64: 6, 11>}, {pipeline_mode = #tpu.pipeline_mode<synchronous>, transform_indices = @transform_1, window_bounds = array<i64: 528, 512>}, {pipeline_mode = #tpu.pipeline_mode<synchronous>, transform_indices = @transform_2, window_bounds = array<i64: 8, 512>}, {transform_indices = @transform_3, window_bounds = array<i64: 6, 128>}]} {
    %c0 = arith.constant 0 : index
    %c0_0 = arith.constant 0 : index
    %0 = vector.load %arg1[%c0, %c0_0] : memref<6x11xf32, #tpu.memory_space<vmem>>, vector<6x11xf32>
    %1 = arith.truncf %0 : vector<6x11xf32> to vector<6x11xbf16>
    %c0_1 = arith.constant 0 : index
    %c0_2 = arith.constant 0 : index
    %2 = vector.load %arg2[%c0_1, %c0_2] : memref<528x512xbf16, #tpu.memory_space<vmem>>, vector<11x512xbf16>
    %cst = arith.constant dense<0.000000e+00> : vector<6x512xf32>
    %3 = tpu.matmul %1, %2, %cst {dimension_numbers = #tpu.dot_dimension_numbers<[1], [0], [0], [1], [0, 0, 1, 1], [], []>} : vector<6x11xbf16>, vector<11x512xbf16>, vector<6x512xf32> -> vector<6x512xf32>
    %c0_3 = arith.constant 0 : index
    %c0_4 = arith.constant 0 : index
    %4 = vector.load %arg3[%c0_3, %c0_4] : memref<8x512xf32, #tpu.memory_space<vmem>>, vector<1x512xf32>
    %5 = vector.broadcast %4 : vector<1x512xf32> to vector<6x512xf32>
    %6 = arith.addf %3, %5 : vector<6x512xf32>
    %cst_5 = arith.constant 0.000000e+00 : f32
    %7 = vector.broadcast %cst_5 : f32 to vector<6x512xf32>
    %8 = arith.maximumf %6, %7 : vector<6x512xf32>
    %c16 = arith.constant 16 : index
    %c0_6 = arith.constant 0 : index
    %9 = vector.load %arg2[%c16, %c0_6] : memref<528x512xbf16, #tpu.memory_space<vmem>>, vector<512x384xbf16>
    %10 = arith.truncf %8 : vector<6x512xf32> to vector<6x512xbf16>
    %cst_7 = arith.constant dense<0.000000e+00> : vector<6x384xf32>
    %11 = tpu.matmul %10, %9, %cst_7 {dimension_numbers = #tpu.dot_dimension_numbers<[1], [0], [0], [1], [0, 0, 1, 1], [], []>} : vector<6x512xbf16>, vector<512x384xbf16>, vector<6x384xf32> -> vector<6x384xf32>
    %c1 = arith.constant 1 : index
    %c0_8 = arith.constant 0 : index
    %12 = vector.load %arg3[%c1, %c0_8] : memref<8x512xf32, #tpu.memory_space<vmem>>, vector<1x384xf32>
    %13 = vector.broadcast %12 : vector<1x384xf32> to vector<6x384xf32>
    %14 = arith.addf %11, %13 : vector<6x384xf32>
    %cst_9 = arith.constant 0.000000e+00 : f32
    %15 = vector.broadcast %cst_9 : f32 to vector<6x384xf32>
    %16 = arith.maximumf %14, %15 : vector<6x384xf32>
    %c16_10 = arith.constant 16 : index
    %c384 = arith.constant 384 : index
    %17 = vector.load %arg2[%c16_10, %c384] : memref<528x512xbf16, #tpu.memory_space<vmem>>, vector<384x128xbf16>
    %18 = arith.truncf %16 : vector<6x384xf32> to vector<6x384xbf16>
    %cst_11 = arith.constant dense<0.000000e+00> : vector<6x128xf32>
    %19 = tpu.matmul %18, %17, %cst_11 {dimension_numbers = #tpu.dot_dimension_numbers<[1], [0], [0], [1], [0, 0, 1, 1], [], []>} : vector<6x384xbf16>, vector<384x128xbf16>, vector<6x128xf32> -> vector<6x128xf32>
    %c2 = arith.constant 2 : index
    %c0_12 = arith.constant 0 : index
    %20 = vector.load %arg3[%c2, %c0_12] : memref<8x512xf32, #tpu.memory_space<vmem>>, vector<1x128xf32>
    %21 = vector.broadcast %20 : vector<1x128xf32> to vector<6x128xf32>
    %22 = arith.addf %19, %21 : vector<6x128xf32>
    %23 = math.tanh %22 : vector<6x128xf32>
    %c0_13 = arith.constant 0 : index
    %c0_14 = arith.constant 0 : index
    %24 = vector.load %arg4[%c0_13, %c0_14] : memref<6x128xf32, #tpu.memory_space<vmem>>, vector<6x128xf32>
    tpu.vector_store %arg4[%c0_13, %c0_14], %23 {strides = array<i32>} : memref<6x128xf32, #tpu.memory_space<vmem>>, vector<6x128xf32>,
    return
  }
  func.func @transform_0(%arg0: i32) -> (i32, i32) {
    %c0_i32 = arith.constant 0 : i32
    %c0_i32_0 = arith.constant 0 : i32
    return %arg0, %c0_i32 : i32, i32
  }
  func.func @transform_1(%arg0: i32) -> (i32, i32) {
    %c0_i32 = arith.constant 0 : i32
    %c0_i32_0 = arith.constant 0 : i32
    %c0_i32_1 = arith.constant 0 : i32
    return %c0_i32, %c0_i32_0 : i32, i32
  }
  func.func @transform_2(%arg0: i32) -> (i32, i32) {
    %c0_i32 = arith.constant 0 : i32
    %c0_i32_0 = arith.constant 0 : i32
    %c0_i32_1 = arith.constant 0 : i32
    return %c0_i32, %c0_i32_0 : i32, i32
  }
  func.func @transform_3(%arg0: i32) -> (i32, i32) {
    %c0_i32 = arith.constant 0 : i32
    %c0_i32_0 = arith.constant 0 : i32
    return %arg0, %c0_i32 : i32, i32
  }
}

</mosaic_0001>

<bundles_post_ra>
// kernel: actor_forward.1
= control target key start
LH: loop header
LB: loop body
LE: loop exit
PB: predicated region body
PF: predicated region fallthrough
CT: control target
= control target key end

     0   :  { %8 = vsyncpa [#allocation3], 0  ;;  %s2008_s0 = inlined_call_operand.hbm [shape: f32[6,11], index: 0, kind: input, shape index: {}]   ;;  %s2009_s1 = inlined_call_operand.hbm [shape: bf16[528,512], index: 1, kind: input, shape index: {}]   ;;  %s2010_s2 = inlined_call_operand.hbm [shape: f32[8,512], index: 2, kind: input, shape index: {}]   ;;  %s2011_s3 = inlined_call_operand.vmem [shape: f32[6,128], index: 3, kind: output, shape index: {}]  }
   0x1   :  { %9 = vsyncpa [#allocation5], 0  ;;  %s25_s14 = sshll.u32 %s2009_s1, 4  ;;  %s1929_s15 = smov [#allocation4]   ;;  %s26_s14 = int_to_ptr.hbm [resolvable:$true] %s25_s14 }
   0x2   :  { %s27_s16 = sshll.u32 %s1929_s15, 4  ;;  %s15_s19 = sshll.u32 %s2008_s0, 4  ;;  %s28_s16 = int_to_ptr.vmem [resolvable:$true] %s27_s16  ;;  %s16_s19 = int_to_ptr.hbm [resolvable:$true] %s15_s19 }
   0x3   :  { %s1930_s20 = smov 256   ;;  %s1931_s21 = smov 16  }
   0x4   :  { %33 = dma.hbm_to_vmem [thread:$0]  %s26_s14, 16896, %s28_s16, [#allocation5], %s1930_s20, %s1930_s20, %s1931_s21  }
   0x5   :  { %s1932_s22 = smov [#allocation2]   ;;  %s39_s26 = sshll.u32 %s2010_s2, 4  ;;  %s40_s26 = int_to_ptr.hbm [resolvable:$true] %s39_s26 }
   0x6   :  { %s17_s23 = sshll.u32 %s1932_s22, 4  ;;  %s1933_s1 = smov [#allocation6]   ;;  %s18_s23 = int_to_ptr.vmem [resolvable:$true] %s17_s23 }
   0x7   :  { %20 = dma.hbm_to_vmem [thread:$0]  %s16_s19, 128, %s18_s23, [#allocation3]  }
   0x8   :  { %s41_s27 = sshll.u32 %s1933_s1, 4  ;;  %s42_s27 = int_to_ptr.vmem [resolvable:$true] %s41_s27 }
   0x9   :  { %44 = dma.hbm_to_vmem [thread:$0]  %s40_s26, 512, %s42_s27, [#allocation5]  }
   0xa   :  { %1925 = dma.done.wait [#allocation3], 128  }
   0xb   :  { %1926 = vsyncadd [#allocation3], 4294967168 }
   0xc   :  { %1927 = dma.done.wait [#allocation5], 17408  }
   0xd   :  { %1928 = vsyncadd [#allocation5], 4294949888  ;;  %vm94_vm0 = vcmask 1044480   ;;  %vm95_vm1 = vcmask 1045504   ;;  %v1934_v0 = vmov 65535   ;;  %vm90_vm2 = vcmask 89088  }
   0xe   :  { %v96_v1 = vsel %vm94_vm0, 4294967295, %v1934_v0  ;;  %v1223_v3 = vld [vmem:[#allocation4] sm:$0xf]  ;;  %v1723_v4 = vld [vmem:[#allocation4 + $0xc] sm:$0x30] }
   0xf   :  { %v97_v2 = vsel %vm95_vm1, %v96_v1, 0  ;;  %v1721_v5 = vld [vmem:[#allocation4 + $0x4] sm:$0xf]  ;;  %v1224_v6 = vor.u32 %v1723_v4, %v1223_v3  ;;  %v1225_v7 = vld [vmem:[#allocation4 + $0x10] sm:$0x30] }
  0x10   :  { %v1231_v8 = vld [vmem:[#allocation4 + $0x8] sm:$0xf]  ;;  %v1724_v9 = vld [vmem:[#allocation4 + $0x14] sm:$0x30]  ;;  %v1228_v10 = vor.u32 %v1721_v5, %v1225_v7  ;;  %v1722_v13 = vld [vmem:[#allocation4 + $0xc] sm:$0xf] }
  0x11   :  { %v1232_v11 = vor.u32 %v1724_v9, %v1231_v8  ;;  %v58_v12 = vld [vmem:[#allocation2] sm:$0x3f]  ;;  %v99_v15 = vand.u32 %v1224_v6, %v97_v2  ;;  %v1423_v17 = vld [vmem:[#allocation4 + $0x200] sm:$0xf]  ;;  %v1771_v18 = vld [vmem:[#allocation4 + $0x20c] sm:$0xf0] }
  0x12   :  { %v1233_v14 = vld [vmem:[#allocation4 + $0x18] sm:$0x30]  ;;  %v1411_v19 = vld [vmem:[#allocation4 + $0x1e0] sm:$0xf]  ;;  %v102_v20 = vand.u32 %v1228_v10, %v97_v2  ;;  %v1964_v22 = vpack.c.bf16 %v58_v12, %v58_v12  ;;  %v1424_v23 = vor.u32 %v1771_v18, %v1423_v17  ;;  %v1768_v24 = vld [vmem:[#allocation4 + $0x1ec] sm:$0xf0] }
  0x13   :  { %v1236_v16 = vor.u32 %v1722_v13, %v1233_v14  ;;  %v105_v21 = vand.u32 %v1232_v11, %v97_v2  ;;  %v1327_v25 = vld [vmem:[#allocation4 + $0x100] sm:$0xf]  ;;  %v1747_v26 = vld [vmem:[#allocation4 + $0x10c] sm:$0xf0]  ;;  %117 = vmatpush.bf16.msra.mxu3 %v99_v15  ;;  %v1412_v34 = vor.u32 %v1768_v24, %v1411_v19 }
  0x14   :  { %v1328_v28 = vor.u32 %v1747_v26, %v1327_v25  ;;  %v1519_v29 = vld [vmem:[#allocation4 + $0x300] sm:$0xf]  ;;  %v1795_v30 = vld [vmem:[#allocation4 + $0x30c] sm:$0xf0]  ;;  %130 = vmatpush.bf16.msra.mxu1 %v102_v20 }
  0x15   :  { %v108_v27 = vand.u32 %v1236_v16, %v97_v2  ;;  %143 = vmatpush.bf16.msra.mxu2 %v105_v21  ;;  %v1520_v31 = vor.u32 %v1795_v30, %v1519_v29  ;;  %v1315_v32 = vld [vmem:[#allocation4 + $0xe0] sm:$0xf]  ;;  %v1744_v33 = vld [vmem:[#allocation4 + $0xec] sm:$0xf0] }
  0x16   :  { %v1507_v35 = vld [vmem:[#allocation4 + $0x2e0] sm:$0xf]  ;;  %v1792_v36 = vld [vmem:[#allocation4 + $0x2ec] sm:$0xf0]  ;;  %1237 = vmatmul.msk.bf16.vlgmr.msra.gmra.mxu3 %vm90_vm2, %v1964_v22  ;;  %819 = vmatpush.bf16.msra.mxu0 %v1328_v28  ;;  %v1316_v39 = vor.u32 %v1744_v33, %v1315_v32 }
  0x17   :  { %156 = vmatpush.bf16.msrb.mxu3 %v108_v27  ;;  %v1399_v37 = vld [vmem:[#allocation4 + $0x1c0] sm:$0xf]  ;;  %v1765_v38 = vld [vmem:[#allocation4 + $0x1cc] sm:$0xf0]  ;;  %1238 = vmatmul.msk.bf16.vlgmr.msra.gmra.mxu1 %vm90_vm2, %v1964_v22  ;;  %v1508_v42 = vor.u32 %v1792_v36, %v1507_v35  ;;  %v1425_v35 = vld [vmem:[#allocation4 + $0x210] sm:$0xf0] }
  0x18   :  { %832 = vmatpush.bf16.msrb.mxu1 %v1424_v23  ;;  %1239 = vmatmul.msk.bf16.vlgmr.msra.gmra.mxu2 %vm90_vm2, %v1964_v22  ;;  %v1303_v40 = vld [vmem:[#allocation4 + $0xc0] sm:$0xf]  ;;  %v1741_v41 = vld [vmem:[#allocation4 + $0xcc] sm:$0xf0]  ;;  %v1400_v43 = vor.u32 %v1765_v38, %v1399_v37 }
  0x19   :  { %845 = vmatpush.bf16.msrb.mxu2 %v1520_v31  ;;  %v1495_v44 = vld [vmem:[#allocation4 + $0x2c0] sm:$0xf]  ;;  %v1789_v45 = vld [vmem:[#allocation4 + $0x2cc] sm:$0xf0]  ;;  %v1304_v48 = vor.u32 %v1741_v41, %v1303_v40 }
  0x1a   :  { %820 = vmatpush.bf16.msra.mxu0 %v1316_v39  ;;  %v1387_v46 = vld [vmem:[#allocation4 + $0x1a0] sm:$0xf]  ;;  %v1762_v47 = vld [vmem:[#allocation4 + $0x1ac] sm:$0xf0]  ;;  %v1496_v52 = vor.u32 %v1789_v45, %v1495_v44  ;;  %v1746_v39 = vld [vmem:[#allocation4 + $0x104] sm:$0xf] }
  0x1b   :  { %v1291_v49 = vld [vmem:[#allocation4 + $0xa0] sm:$0xf]  ;;  %v1738_v50 = vld [vmem:[#allocation4 + $0xac] sm:$0xf0]  ;;  %v1388_v54 = vor.u32 %v1762_v47, %v1387_v46 }
  0x1c   :  { %833 = vmatpush.bf16.msrb.mxu1 %v1412_v34  ;;  %v1615_v51 = vld [vmem:[#allocation4 + $0x400] sm:$0xf]  ;;  %v1819_v53 = vld [vmem:[#allocation4 + $0x40c] sm:$0xf0]  ;;  %v1292_v60 = vor.u32 %v1738_v50, %v1291_v49  ;;  %v1794_v50 = vld [vmem:[#allocation4 + $0x304] sm:$0xf] }
  0x1d   :  { %846 = vmatpush.bf16.msrb.mxu2 %v1508_v42  ;;  %v1375_v55 = vld [vmem:[#allocation4 + $0x180] sm:$0xf]  ;;  %v1786_v57 = vld [vmem:[#allocation4 + $0x2ac] sm:$0xf0]  ;;  %v1616_v58 = vor.u32 %v1819_v53, %v1615_v51  ;;  %v1329_v42 = vld [vmem:[#allocation4 + $0x110] sm:$0xf0] }
  0x1e   :  { %v1483_v56 = vld [vmem:[#allocation4 + $0x2a0] sm:$0xf]  ;;  %821 = vmatpush.bf16.msra.mxu0 %v1304_v48  ;;  %v1759_v59 = vld [vmem:[#allocation4 + $0x18c] sm:$0xf0]  ;;  %v1521_v51 = vld [vmem:[#allocation4 + $0x310] sm:$0xf0] }
  0x1f   :  { %v1603_v61 = vld [vmem:[#allocation4 + $0x3e0] sm:$0xf]  ;;  %v1816_v62 = vld [vmem:[#allocation4 + $0x3ec] sm:$0xf0]  ;;  %858 = vmatpush.bf16.msra.mxu3 %v1616_v58  ;;  %v1484_v2 = vor.u32 %v1786_v57, %v1483_v56  ;;  %v1376_v3 = vor.u32 %v1759_v59, %v1375_v55  ;;  %v1413_v53 = vld [vmem:[#allocation4 + $0x1f0] sm:$0xf0] }
  0x20   :  { %834 = vmatpush.bf16.msrb.mxu1 %v1400_v43  ;;  %v1279_v63 = vld [vmem:[#allocation4 + $0x80] sm:$0xf]  ;;  %v1735_v0 = vld [vmem:[#allocation4 + $0x8c] sm:$0xf0]  ;;  %v1604_v1 = vor.u32 %v1816_v62, %v1603_v61  ;;  %v1743_v55 = vld [vmem:[#allocation4 + $0xe4] sm:$0xf]  ;;  %v1524_v61 = vor.u32 %v1794_v50, %v1521_v51 }
  0x21   :  { %847 = vmatpush.bf16.msrb.mxu2 %v1496_v52  ;;  %v1471_v4 = vld [vmem:[#allocation4 + $0x280] sm:$0xf]  ;;  %v1783_v5 = vld [vmem:[#allocation4 + $0x28c] sm:$0xf0]  ;;  %v1280_v9 = vor.u32 %v1735_v0, %v1279_v63  ;;  %v1767_v52 = vld [vmem:[#allocation4 + $0x1e4] sm:$0xf] }
  0x22   :  { %v1591_v6 = vld [vmem:[#allocation4 + $0x3c0] sm:$0xf]  ;;  %822 = vmatpush.bf16.msra.mxu0 %v1292_v60  ;;  %v1756_v8 = vld [vmem:[#allocation4 + $0x16c] sm:$0xf0]  ;;  %v1472_v14 = vor.u32 %v1783_v5, %v1471_v4  ;;  %v1317_v58 = vld [vmem:[#allocation4 + $0xf0] sm:$0xf0]  ;;  %v1416_v62 = vor.u32 %v1767_v52, %v1413_v53 }
  0x23   :  { %v1363_v7 = vld [vmem:[#allocation4 + $0x160] sm:$0xf]  ;;  %v1813_v10 = vld [vmem:[#allocation4 + $0x3cc] sm:$0xf0]  ;;  %859 = vmatpush.bf16.msra.mxu3 %v1604_v1  ;;  %v1791_v63 = vld [vmem:[#allocation4 + $0x2e4] sm:$0xf] }
  0x24   :  { %835 = vmatpush.bf16.msrb.mxu1 %v1388_v54  ;;  %v1267_v11 = vld [vmem:[#allocation4 + $0x60] sm:$0xf]  ;;  %v1732_v12 = vld [vmem:[#allocation4 + $0x6c] sm:$0xf0]  ;;  %v1592_v13 = vor.u32 %v1813_v10, %v1591_v6  ;;  %v1364_v17 = vor.u32 %v1756_v8, %v1363_v7  ;;  %v1332_v54 = vor.u32 %v1746_v39, %v1329_v42  ;;  %v1509_v0 = vld [vmem:[#allocation4 + $0x2f0] sm:$0xf0] }
  0x25   :  { %848 = vmatpush.bf16.msrb.mxu2 %v1484_v2  ;;  %v1579_v15 = vld [vmem:[#allocation4 + $0x3a0] sm:$0xf]  ;;  %v1810_v16 = vld [vmem:[#allocation4 + $0x3ac] sm:$0xf0]  ;;  %v1268_v23 = vor.u32 %v1732_v12, %v1267_v11  ;;  %v1764_v1 = vld [vmem:[#allocation4 + $0x1c4] sm:$0xf]  ;;  %v1512_v7 = vor.u32 %v1791_v63, %v1509_v0 }
  0x26   :  { %v1459_v18 = vld [vmem:[#allocation4 + $0x260] sm:$0xf]  ;;  %v1780_v19 = vld [vmem:[#allocation4 + $0x26c] sm:$0xf0]  ;;  %1240 = vmatmul.msk.bf16.vlgmr.msrb.gmra.mxu3 %vm90_vm2, %v1964_v22  ;;  %823 = vmatpush.bf16.msra.mxu0 %v1280_v9  ;;  %v1580_v26 = vor.u32 %v1810_v16, %v1579_v15  ;;  %v1770_v22 = vld [vmem:[#allocation4 + $0x204] sm:$0xf] }
  0x27   :  { %v1351_v20 = vld [vmem:[#allocation4 + $0x140] sm:$0xf]  ;;  %v1753_v21 = vld [vmem:[#allocation4 + $0x14c] sm:$0xf0]  ;;  %860 = vmatpush.bf16.msra.mxu3 %v1592_v13  ;;  %v1460_v27 = vor.u32 %v1780_v19, %v1459_v18  ;;  %v1428_v48 = vor.u32 %v1770_v22, %v1425_v35  ;;  %v1401_v2 = vld [vmem:[#allocation4 + $0x1d0] sm:$0xf0] }
  0x28   :  { %836 = vmatpush.bf16.msrb.mxu1 %v1376_v3  ;;  %v1255_v24 = vld [vmem:[#allocation4 + $0x40] sm:$0xf]  ;;  %v1729_v25 = vld [vmem:[#allocation4 + $0x4c] sm:$0xf0]  ;;  %v1352_v30 = vor.u32 %v1753_v21, %v1351_v20  ;;  %v1320_v3 = vor.u32 %v1743_v55, %v1317_v58  ;;  %v1740_v5 = vld [vmem:[#allocation4 + $0xc4] sm:$0xf]  ;;  %v1404_v8 = vor.u32 %v1764_v1, %v1401_v2 }
  0x29   :  { %849 = vmatpush.bf16.msrb.mxu2 %v1472_v14  ;;  %v1567_v28 = vld [vmem:[#allocation4 + $0x380] sm:$0xf]  ;;  %v1807_v29 = vld [vmem:[#allocation4 + $0x38c] sm:$0xf0]  ;;  %v1256_v36 = vor.u32 %v1729_v25, %v1255_v24  ;;  %v1305_v6 = vld [vmem:[#allocation4 + $0xd0] sm:$0xf0] }
  0x2a   :  { %v1339_v31 = vld [vmem:[#allocation4 + $0x120] sm:$0xf]  ;;  %v1777_v33 = vld [vmem:[#allocation4 + $0x24c] sm:$0xf0]  ;;  %824 = vmatpush.bf16.msra.mxu0 %v1268_v23  ;;  %v1568_v40 = vor.u32 %v1807_v29, %v1567_v28  ;;  %v1788_v9 = vld [vmem:[#allocation4 + $0x2c4] sm:$0xf]  ;;  %v1308_v13 = vor.u32 %v1740_v5, %v1305_v6 }
  0x2b   :  { %v1447_v32 = vld [vmem:[#allocation4 + $0x240] sm:$0xf]  ;;  %v1750_v34 = vld [vmem:[#allocation4 + $0x12c] sm:$0xf0]  ;;  %861 = vmatpush.bf16.msra.mxu3 %v1580_v26  ;;  %v1497_v10 = vld [vmem:[#allocation4 + $0x2d0] sm:$0xf0] }
  0x2c   :  { %837 = vmatpush.bf16.msrb.mxu1 %v1364_v17  ;;  %v1243_v37 = vld [vmem:[#allocation4 + $0x20] sm:$0xf]  ;;  %v1726_v38 = vld [vmem:[#allocation4 + $0x2c] sm:$0xf0]  ;;  %v1448_v41 = vor.u32 %v1777_v33, %v1447_v32  ;;  %v1340_v45 = vor.u32 %v1750_v34, %v1339_v31  ;;  %v1761_v11 = vld [vmem:[#allocation4 + $0x1a4] sm:$0xf]  ;;  %v1500_v16 = vor.u32 %v1788_v9, %v1497_v10 }
  0x2d   :  { %850 = vmatpush.bf16.msrb.mxu2 %v1460_v27  ;;  %v1555_v43 = vld [vmem:[#allocation4 + $0x360] sm:$0xf]  ;;  %v1804_v44 = vld [vmem:[#allocation4 + $0x36c] sm:$0xf0]  ;;  %v1244_v49 = vor.u32 %v1726_v38, %v1243_v37  ;;  %v1389_v12 = vld [vmem:[#allocation4 + $0x1b0] sm:$0xf0] }
  0x2e   :  { %v1435_v46 = vld [vmem:[#allocation4 + $0x220] sm:$0xf]  ;;  %v1774_v47 = vld [vmem:[#allocation4 + $0x22c] sm:$0xf0]  ;;  %825 = vmatpush.bf16.msra.mxu0 %v1256_v36  ;;  %v1556_v56 = vor.u32 %v1804_v44, %v1555_v43  ;;  %v1737_v14 = vld [vmem:[#allocation4 + $0xa4] sm:$0xf]  ;;  %v1392_v17 = vor.u32 %v1761_v11, %v1389_v12 }
  0x2f   :  { %862 = vmatpush.bf16.msra.mxu3 %v1568_v40  ;;  %v1436_v57 = vor.u32 %v1774_v47, %v1435_v46  ;;  %v1543_v59 = vld [vmem:[#allocation4 + $0x340] sm:$0xf]  ;;  %v1801_v60 = vld [vmem:[#allocation4 + $0x34c] sm:$0xf0]  ;;  %v1293_v15 = vld [vmem:[#allocation4 + $0xb0] sm:$0xf0] }
  0x30   :  { %838 = vmatpush.bf16.msrb.mxu1 %v1352_v30  ;;  %v1544_v4 = vor.u32 %v1801_v60, %v1543_v59  ;;  %v1785_v18 = vld [vmem:[#allocation4 + $0x2a4] sm:$0xf]  ;;  %v1485_v19 = vld [vmem:[#allocation4 + $0x2b0] sm:$0xf0]  ;;  %v1296_v23 = vor.u32 %v1737_v14, %v1293_v15  ;;  %v1531_v29 = vld [vmem:[#allocation4 + $0x320] sm:$0xf] }
  0x31   :  { %851 = vmatpush.bf16.msrb.mxu2 %v1448_v41  ;;  %v1758_v20 = vld [vmem:[#allocation4 + $0x184] sm:$0xf]  ;;  %v1377_v21 = vld [vmem:[#allocation4 + $0x190] sm:$0xf0]  ;;  %v1488_v24 = vor.u32 %v1785_v18, %v1485_v19  ;;  %v1798_v30 = vld [vmem:[#allocation4 + $0x32c] sm:$0xf0] }
  0x32   :  { %826 = vmatpush.bf16.msra.mxu0 %v1244_v49  ;;  %v1380_v25 = vor.u32 %v1758_v20, %v1377_v21  ;;  %v1755_v26 = vld [vmem:[#allocation4 + $0x164] sm:$0xf]  ;;  %v1365_v27 = vld [vmem:[#allocation4 + $0x170] sm:$0xf0]  ;;  %v1532_v31 = vor.u32 %v1798_v30, %v1531_v29 }
  0x33   :  { %863 = vmatpush.bf16.msra.mxu3 %v1556_v56  ;;  %v1368_v28 = vor.u32 %v1755_v26, %v1365_v27  ;;  %v1734_v32 = vld [vmem:[#allocation4 + $0x84] sm:$0xf]  ;;  %v1281_v33 = vld [vmem:[#allocation4 + $0x90] sm:$0xf0]  ;;  %v1431_v26 = vld [vmem:[#allocation4 + $0x208] sm:$0xf] }
  0x34   :  { %839 = vmatpush.bf16.msrb.mxu1 %v1340_v45  ;;  %v1782_v34 = vld [vmem:[#allocation4 + $0x284] sm:$0xf]  ;;  %v1284_v22 = vor.u32 %v1734_v32, %v1281_v33  ;;  %v1473_v35 = vld [vmem:[#allocation4 + $0x290] sm:$0xf0]  ;;  %v1772_v27 = vld [vmem:[#allocation4 + $0x214] sm:$0xf0] }
  0x35   :  { %852 = vmatpush.bf16.msrb.mxu2 %v1436_v57  ;;  %v1818_v36 = vld [vmem:[#allocation4 + $0x404] sm:$0xf]  ;;  %v1617_v37 = vld [vmem:[#allocation4 + $0x410] sm:$0xf0]  ;;  %v1476_v38 = vor.u32 %v1782_v34, %v1473_v35  ;;  %v1419_v34 = vld [vmem:[#allocation4 + $0x1e8] sm:$0xf] }
  0x36   :  { %871 = vmatpush.bf16.msrb.mxu0 %v1332_v54  ;;  %v1620_v39 = vor.u32 %v1818_v36, %v1617_v37  ;;  %v1752_v40 = vld [vmem:[#allocation4 + $0x144] sm:$0xf]  ;;  %v1353_v41 = vld [vmem:[#allocation4 + $0x150] sm:$0xf0]  ;;  %v1335_v37 = vld [vmem:[#allocation4 + $0x108] sm:$0xf] }
  0x37   :  { %864 = vmatpush.bf16.msra.mxu3 %v1544_v4  ;;  %v1356_v42 = vor.u32 %v1752_v40, %v1353_v41  ;;  %v1731_v43 = vld [vmem:[#allocation4 + $0x64] sm:$0xf]  ;;  %v1269_v44 = vld [vmem:[#allocation4 + $0x70] sm:$0xf0]  ;;  %v1527_v40 = vld [vmem:[#allocation4 + $0x308] sm:$0xf] }
  0x38   :  { %884 = vmatpush.bf16.msra.mxu1 %v1428_v48  ;;  %v1779_v45 = vld [vmem:[#allocation4 + $0x264] sm:$0xf]  ;;  %v1272_v46 = vor.u32 %v1731_v43, %v1269_v44  ;;  %v1461_v47 = vld [vmem:[#allocation4 + $0x270] sm:$0xf0]  ;;  %v1796_v41 = vld [vmem:[#allocation4 + $0x314] sm:$0xf0] }
  0x39   :  { %897 = vmatpush.bf16.msra.mxu2 %v1524_v61  ;;  %v1815_v48 = vld [vmem:[#allocation4 + $0x3e4] sm:$0xf]  ;;  %v1605_v49 = vld [vmem:[#allocation4 + $0x3f0] sm:$0xf0]  ;;  %v1464_v50 = vor.u32 %v1779_v45, %v1461_v47  ;;  %v1407_v47 = vld [vmem:[#allocation4 + $0x1c8] sm:$0xf] }
  0x3a   :  { %872 = vmatpush.bf16.msrb.mxu0 %v1320_v3  ;;  %v1608_v51 = vor.u32 %v1815_v48, %v1605_v49  ;;  %v1749_v52 = vld [vmem:[#allocation4 + $0x124] sm:$0xf]  ;;  %v1341_v53 = vld [vmem:[#allocation4 + $0x130] sm:$0xf0]  ;;  %v1766_v48 = vld [vmem:[#allocation4 + $0x1d4] sm:$0xf0] }
  0x3b   :  { %865 = vmatpush.bf16.msra.mxu3 %v1532_v31  ;;  %v1344_v54 = vor.u32 %v1749_v52, %v1341_v53  ;;  %v1728_v55 = vld [vmem:[#allocation4 + $0x44] sm:$0xf]  ;;  %v1257_v56 = vld [vmem:[#allocation4 + $0x50] sm:$0xf0]  ;;  %v1432_v31 = vor.u32 %v1772_v27, %v1431_v26  ;;  %v1745_v52 = vld [vmem:[#allocation4 + $0xf4] sm:$0xf0] }
  0x3c   :  { %885 = vmatpush.bf16.msra.mxu1 %v1416_v62  ;;  %v1776_v57 = vld [vmem:[#allocation4 + $0x244] sm:$0xf]  ;;  %v1260_v58 = vor.u32 %v1728_v55, %v1257_v56  ;;  %v1449_v59 = vld [vmem:[#allocation4 + $0x250] sm:$0xf0]  ;;  %v1793_v55 = vld [vmem:[#allocation4 + $0x2f4] sm:$0xf0]  ;;  %v1408_v56 = vor.u32 %v1766_v48, %v1407_v47 }
  0x3d   :  { %898 = vmatpush.bf16.msra.mxu2 %v1512_v7  ;;  %v1812_v60 = vld [vmem:[#allocation4 + $0x3c4] sm:$0xf]  ;;  %v1593_v61 = vld [vmem:[#allocation4 + $0x3d0] sm:$0xf0]  ;;  %v1452_v62 = vor.u32 %v1776_v57, %v1449_v59  ;;  %v1395_v59 = vld [vmem:[#allocation4 + $0x1a8] sm:$0xf] }
  0x3e   :  { %873 = vmatpush.bf16.msrb.mxu0 %v1308_v13  ;;  %v1596_v63 = vor.u32 %v1812_v60, %v1593_v61  ;;  %v1725_v0 = vld [vmem:[#allocation4 + $0x24] sm:$0xf]  ;;  %v1245_v1 = vld [vmem:[#allocation4 + $0x30] sm:$0xf0]  ;;  %v1763_v60 = vld [vmem:[#allocation4 + $0x1b4] sm:$0xf0] }
  0x3f   :  { %910 = vmatpush.bf16.msrb.mxu3 %v1620_v39  ;;  %v1773_v2 = vld [vmem:[#allocation4 + $0x224] sm:$0xf]  ;;  %v1248_v3 = vor.u32 %v1725_v0, %v1245_v1  ;;  %v1437_v4 = vld [vmem:[#allocation4 + $0x230] sm:$0xf0]  ;;  %v1742_v0 = vld [vmem:[#allocation4 + $0xd4] sm:$0xf0] }
  0x40   :  { %886 = vmatpush.bf16.msra.mxu1 %v1404_v8  ;;  %v1809_v5 = vld [vmem:[#allocation4 + $0x3a4] sm:$0xf]  ;;  %v1581_v6 = vld [vmem:[#allocation4 + $0x3b0] sm:$0xf0]  ;;  %v1440_v7 = vor.u32 %v1773_v2, %v1437_v4  ;;  %v1503_v1 = vld [vmem:[#allocation4 + $0x2c8] sm:$0xf] }
  0x41   :  { %899 = vmatpush.bf16.msra.mxu2 %v1500_v16  ;;  %v1584_v8 = vor.u32 %v1809_v5, %v1581_v6  ;;  %v1806_v9 = vld [vmem:[#allocation4 + $0x384] sm:$0xf]  ;;  %v1569_v10 = vld [vmem:[#allocation4 + $0x390] sm:$0xf0]  ;;  %v1790_v2 = vld [vmem:[#allocation4 + $0x2d4] sm:$0xf0] }
  0x42   :  { %874 = vmatpush.bf16.msrb.mxu0 %v1296_v23  ;;  %v1572_v11 = vor.u32 %v1806_v9, %v1569_v10  ;;  %v1803_v12 = vld [vmem:[#allocation4 + $0x364] sm:$0xf]  ;;  %v1557_v13 = vld [vmem:[#allocation4 + $0x370] sm:$0xf0]  ;;  %v1383_v5 = vld [vmem:[#allocation4 + $0x188] sm:$0xf] }
  0x43   :  { %911 = vmatpush.bf16.msrb.mxu3 %v1608_v51  ;;  %v1560_v14 = vor.u32 %v1803_v12, %v1557_v13  ;;  %v1800_v15 = vld [vmem:[#allocation4 + $0x344] sm:$0xf]  ;;  %v1545_v16 = vld [vmem:[#allocation4 + $0x350] sm:$0xf0]  ;;  %v1323_v51 = vld [vmem:[#allocation4 + $0xe8] sm:$0xf] }
  0x44   :  { %887 = vmatpush.bf16.msra.mxu1 %v1392_v17  ;;  %v1548_v17 = vor.u32 %v1800_v15, %v1545_v16  ;;  %v1974_v18 = vld [vmem:[#allocation6] ss:$8 sm:$0xf]  ;;  %v1797_v19 = vld [vmem:[#allocation4 + $0x324] sm:$0xf] }
  0x45   :  { %900 = vmatpush.bf16.msra.mxu2 %v1488_v24  ;;  %v1533_v20 = vld [vmem:[#allocation4 + $0x330] sm:$0xf0]  ;;  %v67_v23 = vperm.slane %v1974_v18, 1  ;;  %v68_v30 = vperm.slane %v1974_v18, 2  ;;  %v1760_v6 = vld [vmem:[#allocation4 + $0x194] sm:$0xf0] }
  0x46   :  { %875 = vmatpush.bf16.msrb.mxu0 %v1284_v22  ;;  %v1536_v21 = vor.u32 %v1797_v19, %v1533_v20  ;;  %v1769_v22 = vld [vmem:[#allocation4 + $0x1f4] sm:$0xf0]  ;;  %v1299_v9 = vld [vmem:[#allocation4 + $0xa8] sm:$0xf]  ;;  %v1384_v13 = vor.u32 %v1760_v6, %v1383_v5 }
  0x47   :  { %912 = vmatpush.bf16.msrb.mxu3 %v1596_v63  ;;  %v1420_v43 = vor.u32 %v1769_v22, %v1419_v34  ;;  %v1311_v63 = vld [vmem:[#allocation4 + $0xc8] sm:$0xf]  ;;  %v1739_v10 = vld [vmem:[#allocation4 + $0xb4] sm:$0xf0] }
  0x48   :  { %888 = vmatpush.bf16.msra.mxu1 %v1380_v25  ;;  %v1312_v4 = vor.u32 %v1742_v0, %v1311_v63  ;;  %v1787_v12 = vld [vmem:[#allocation4 + $0x2b4] sm:$0xf0]  ;;  %v1300_v15 = vor.u32 %v1739_v10, %v1299_v9  ;;  %v1371_v16 = vld [vmem:[#allocation4 + $0x168] sm:$0xf] }
  0x49   :  { %901 = vmatpush.bf16.msra.mxu2 %v1476_v38  ;;  %v1748_v38 = vld [vmem:[#allocation4 + $0x114] sm:$0xf0]  ;;  %v1623_v27 = vld [vmem:[#allocation4 + $0x408] sm:$0xf] }
  0x4a   :  { %876 = vmatpush.bf16.msrb.mxu0 %v1272_v46  ;;  %v1336_v46 = vor.u32 %v1748_v38, %v1335_v37  ;;  %v1275_v22 = vld [vmem:[#allocation4 + $0x68] sm:$0xf]  ;;  %v1781_v38 = vld [vmem:[#allocation4 + $0x274] sm:$0xf0] }
  0x4b   :  { %913 = vmatpush.bf16.msrb.mxu3 %v1584_v8  ;;  %v1504_v8 = vor.u32 %v1790_v2, %v1503_v1  ;;  %v1467_v37 = vld [vmem:[#allocation4 + $0x268] sm:$0xf]  ;;  %v1775_v63 = vld [vmem:[#allocation4 + $0x234] sm:$0xf0] }
  0x4c   :  { %889 = vmatpush.bf16.msra.mxu1 %v1368_v28  ;;  %v66_v28 = vperm.slane %v1974_v18, 0  ;;  %v1263_v47 = vld [vmem:[#allocation4 + $0x48] sm:$0xf]  ;;  %v1811_v1 = vld [vmem:[#allocation4 + $0x3b4] sm:$0xf0] }
  0x4d   :  { %902 = vmatpush.bf16.msra.mxu2 %v1464_v50  ;;  %v1528_v50 = vor.u32 %v1796_v41, %v1527_v40  ;;  %v1611_v40 = vld [vmem:[#allocation4 + $0x3e8] sm:$0xf]  ;;  %v1817_v41 = vld [vmem:[#allocation4 + $0x3f4] sm:$0xf0] }
  0x4e   :  { %877 = vmatpush.bf16.msrb.mxu0 %v1260_v58  ;;  %v1324_v58 = vor.u32 %v1745_v52, %v1323_v51  ;;  %v1612_v48 = vor.u32 %v1817_v41, %v1611_v40  ;;  %v1455_v51 = vld [vmem:[#allocation4 + $0x248] sm:$0xf]  ;;  %v1778_v52 = vld [vmem:[#allocation4 + $0x254] sm:$0xf0]  ;;  %v1822_v40 = vld [vmem:[#allocation4 + $0x58] sm:$0xf0] }
  0x4f   :  { %914 = vmatpush.bf16.msrb.mxu3 %v1572_v11  ;;  %v1491_v11 = vld [vmem:[#allocation4 + $0x2a8] sm:$0xf]  ;;  %v1808_v6 = vld [vmem:[#allocation4 + $0x394] sm:$0xf0]  ;;  %v1679_v41 = vld [vmem:[#allocation4 + $0x1cc] sm:$0xf] }
  0x50   :  { %890 = vmatpush.bf16.msra.mxu1 %v1356_v42  ;;  %v1492_v20 = vor.u32 %v1787_v12, %v1491_v11  ;;  %v1587_v0 = vld [vmem:[#allocation4 + $0x3a8] sm:$0xf]  ;;  %v1805_v9 = vld [vmem:[#allocation4 + $0x374] sm:$0xf0] }
  0x51   :  { %903 = vmatpush.bf16.msra.mxu2 %v1452_v62  ;;  %v1575_v5 = vld [vmem:[#allocation4 + $0x388] sm:$0xf]  ;;  %v1802_v12 = vld [vmem:[#allocation4 + $0x354] sm:$0xf0] }
  0x52   :  { %878 = vmatpush.bf16.msrb.mxu0 %v1248_v3  ;;  %v1396_v3 = vor.u32 %v1763_v60, %v1395_v59  ;;  %v1251_v59 = vld [vmem:[#allocation4 + $0x28] sm:$0xf] }
  0x53   :  { %915 = vmatpush.bf16.msrb.mxu3 %v1560_v14  ;;  %v1551_v11 = vld [vmem:[#allocation4 + $0x348] sm:$0xf] }
  0x54   :  { %891 = vmatpush.bf16.msra.mxu1 %v1344_v54  ;;  %v1515_v54 = vld [vmem:[#allocation4 + $0x2e8] sm:$0xf] }
  0x55   :  { %904 = vmatpush.bf16.msra.mxu2 %v1440_v7  ;;  %v1516_v61 = vor.u32 %v1793_v55, %v1515_v54  ;;  %v69_v7 = vperm.slane %v1974_v18, 3  ;;  %v1479_v18 = vld [vmem:[#allocation4 + $0x288] sm:$0xf] }
  0x56   :  { %v1599_v55 = vld [vmem:[#allocation4 + $0x3c8] sm:$0xf] }
  0x57   :  { %916 = vmatpush.bf16.msrb.mxu3 %v1548_v17  ;;  %v1757_v17 = vld [vmem:[#allocation4 + $0x174] sm:$0xf0] }
  0x58   :  { %v1372_v26 = vor.u32 %v1757_v17, %v1371_v16  ;;  %v1655_v16 = vld [vmem:[#allocation4 + $0x10c] sm:$0xf]  ;;  %v1828_v17 = vld [vmem:[#allocation4 + $0x118] sm:$0xf0] }
  0x5b   :  { %917 = vmatpush.bf16.msrb.mxu3 %v1536_v21  ;;  %v1287_v21 = vld [vmem:[#allocation4 + $0x88] sm:$0xf] }
  0x94   :  { %v132_v24 = vpop.f32.mrf.mxu1 }
  0x95   :  { %v133_v25 = vadd.f32 %v132_v24, %v67_v23  ;;  %v1736_v23 = vld [vmem:[#allocation4 + $0x94] sm:$0xf0] }
  0x96   :  { %v1784_v24 = vld [vmem:[#allocation4 + $0x294] sm:$0xf0] }
  0x97   :  { %v163_v29 = vmax.f32 %v133_v25, 0.0  ;;  %v1480_v34 = vor.u32 %v1784_v24, %v1479_v18  ;;  %v1643_v24 = vld [vmem:[#allocation4 + $0xac] sm:$0xf] }
  0x99   :  { %v1979_v32 = vpack.c.bf16 %v163_v29, %v163_v29  ;;  %v119_v33 = vpop.f32.mrf.mxu3  ;;  %v1359_v29 = vld [vmem:[#allocation4 + $0x148] sm:$0xf] }
  0x9a   :  { %v120_v35 = vadd.f32 %v119_v33, %v66_v28  ;;  %v1820_v28 = vld [vmem:[#allocation4 + $0x414] sm:$0xf0]  ;;  %v1288_v33 = vor.u32 %v1736_v23, %v1287_v21  ;;  %v1647_v21 = vld [vmem:[#allocation4 + $0xcc] sm:$0xf]  ;;  %v1826_v23 = vld [vmem:[#allocation4 + $0xd8] sm:$0xf0] }
  0x9b   :  { %v145_v36 = vpop.f32.mrf.mxu2  ;;  %840 = vmatmul.bf16.vlgmr.msrb.gmra.mxu1 %v1979_v32  ;;  %v1648_v18 = vor.u32 %v1826_v23, %v1647_v21 }
  0x9c   :  { %v146_v39 = vadd.f32 %v145_v36, %v68_v30  ;;  %v162_v42 = vmax.f32 %v120_v35, 0.0  ;;  %936 = vmatpush.bf16.msrb.mxu1 %v1432_v31  ;;  %v134_v44 = vpop.f32.mrf.mxu1  ;;  %v1754_v30 = vld [vmem:[#allocation4 + $0x154] sm:$0xf0]  ;;  %v1624_v35 = vor.u32 %v1820_v28, %v1623_v27  ;;  %v1639_v27 = vld [vmem:[#allocation4 + $0x8c] sm:$0xf] }
  0x9d   :  { %v1733_v36 = vld [vmem:[#allocation4 + $0x74] sm:$0xf0]  ;;  %v1824_v28 = vld [vmem:[#allocation4 + $0x98] sm:$0xf0] }
  0x9e   :  { %v164_v45 = vmax.f32 %v146_v39, 0.0  ;;  %v1982_v49 = vpack.c.bf16 %v162_v42, %v162_v42  ;;  %v1360_v39 = vor.u32 %v1754_v30, %v1359_v29  ;;  %v1751_v44 = vld [vmem:[#allocation4 + $0x134] sm:$0xf0]  ;;  %v1687_v29 = vld [vmem:[#allocation4 + $0x20c] sm:$0xf]  ;;  %v1640_v30 = vor.u32 %v1824_v28, %v1639_v27 }
  0xa0   :  { %v1984_v53 = vpack.c.bf16 %v164_v45, %v164_v45  ;;  %937 = vmatpush.bf16.msrb.mxu1 %v1420_v43  ;;  %827 = vmatmul.bf16.vlgmr.msra.gmra.mxu0 %v1982_v49  ;;  %v1347_v43 = vld [vmem:[#allocation4 + $0x128] sm:$0xf]  ;;  %v1276_v45 = vor.u32 %v1733_v36, %v1275_v22  ;;  %v1823_v22 = vld [vmem:[#allocation4 + $0x78] sm:$0xf0] }
  0xa1   :  { %v121_v57 = vpop.f32.mrf.mxu3  ;;  %923 = vmatpush.bf16.msra.mxu0 %v1336_v46  ;;  %v1468_v46 = vor.u32 %v1781_v38, %v1467_v37  ;;  %v1348_v54 = vor.u32 %v1751_v44, %v1347_v43  ;;  %v1835_v37 = vld [vmem:[#allocation4 + $0x1f8] sm:$0xf0] }
  0xa2   :  { %853 = vmatmul.bf16.vlgmr.msrb.gmra.mxu2 %v1984_v53  ;;  %v1834_v43 = vld [vmem:[#allocation4 + $0x1d8] sm:$0xf0] }
  0xa3   :  { %949 = vmatpush.bf16.msrb.mxu2 %v1528_v50  ;;  %v147_v62 = vpop.f32.mrf.mxu2  ;;  %v1730_v50 = vld [vmem:[#allocation4 + $0x54] sm:$0xf0]  ;;  %v1680_v44 = vor.u32 %v1834_v43, %v1679_v41 }
  0xa4   :  { %938 = vmatpush.bf16.msrb.mxu1 %v1408_v56  ;;  %v1814_v56 = vld [vmem:[#allocation4 + $0x3d4] sm:$0xf0]  ;;  %v1264_v57 = vor.u32 %v1730_v50, %v1263_v47  ;;  %v1443_v62 = vld [vmem:[#allocation4 + $0x228] sm:$0xf]  ;;  %v1675_v47 = vld [vmem:[#allocation4 + $0x1ac] sm:$0xf] }
  0xa5   :  { %924 = vmatpush.bf16.msra.mxu0 %v1324_v58  ;;  %v1456_v58 = vor.u32 %v1778_v52, %v1455_v51  ;;  %v1600_v60 = vor.u32 %v1814_v56, %v1599_v55  ;;  %v1833_v50 = vld [vmem:[#allocation4 + $0x1b8] sm:$0xf0]  ;;  %v1719_v56 = vld [vmem:[#allocation4 + $0x30c] sm:$0xf] }
  0xa6   :  { %v1676_v52 = vor.u32 %v1833_v50, %v1675_v47  ;;  %v1832_v55 = vld [vmem:[#allocation4 + $0x198] sm:$0xf0] }
  0xa7   :  { %950 = vmatpush.bf16.msrb.mxu2 %v1516_v61  ;;  %v1727_v61 = vld [vmem:[#allocation4 + $0x34] sm:$0xf0] }
  0xa8   :  { %939 = vmatpush.bf16.msrb.mxu1 %v1396_v3  ;;  %v1252_v2 = vor.u32 %v1727_v61, %v1251_v59  ;;  %v1444_v3 = vor.u32 %v1775_v63, %v1443_v62  ;;  %v1667_v61 = vld [vmem:[#allocation4 + $0x16c] sm:$0xf]  ;;  %v1831_v62 = vld [vmem:[#allocation4 + $0x178] sm:$0xf0] }
  0xa9   :  { %v158_v14 = vpop.f32.mrf.mxu3  ;;  %925 = vmatpush.bf16.msra.mxu0 %v1312_v4  ;;  %v1588_v4 = vor.u32 %v1811_v1, %v1587_v0  ;;  %v1715_v63 = vld [vmem:[#allocation4 + $0x2ec] sm:$0xf]  ;;  %v1668_v0 = vor.u32 %v1831_v62, %v1667_v61  ;;  %v1843_v1 = vld [vmem:[#allocation4 + $0x2f8] sm:$0xf0] }
  0xaa   :  { %v159_v19 = vadd.f32 %v158_v14, %v69_v7  ;;  %v1576_v7 = vor.u32 %v1808_v6, %v1575_v5  ;;  %v1799_v14 = vld [vmem:[#allocation4 + $0x334] sm:$0xf0]  ;;  %v1830_v5 = vld [vmem:[#allocation4 + $0x158] sm:$0xf0]  ;;  %v1711_v6 = vld [vmem:[#allocation4 + $0x2cc] sm:$0xf] }
  0xab   :  { %951 = vmatpush.bf16.msrb.mxu2 %v1504_v8  ;;  %892 = vmatmul.bf16.vlgmr.msra.gmra.mxu1 %v1979_v32  ;;  %v1563_v8 = vld [vmem:[#allocation4 + $0x368] sm:$0xf] }
  0xac   :  { %v165_v25 = vmax.f32 %v159_v19, 0.0  ;;  %940 = vmatpush.bf16.msrb.mxu1 %v1384_v13  ;;  %v1564_v10 = vor.u32 %v1805_v9, %v1563_v8  ;;  %v1539_v13 = vld [vmem:[#allocation4 + $0x328] sm:$0xf]  ;;  %v1656_v19 = vor.u32 %v1828_v17, %v1655_v16  ;;  %v1842_v8 = vld [vmem:[#allocation4 + $0x2d8] sm:$0xf0] }
  0xad   :  { %926 = vmatpush.bf16.msra.mxu0 %v1300_v15  ;;  %v1540_v15 = vor.u32 %v1799_v14, %v1539_v13  ;;  %v1829_v13 = vld [vmem:[#allocation4 + $0x138] sm:$0xf0]  ;;  %v1707_v14 = vld [vmem:[#allocation4 + $0x2ac] sm:$0xf] }
  0xae   :  { %v1990_v31 = vpack.c.bf16 %v165_v25, %v165_v25  ;;  %v1825_v25 = vld [vmem:[#allocation4 + $0xb8] sm:$0xf0] }
  0xaf   :  { %952 = vmatpush.bf16.msrb.mxu2 %v1492_v20  ;;  %v1827_v20 = vld [vmem:[#allocation4 + $0xf8] sm:$0xf0] }
  0xb0   :  { %941 = vmatpush.bf16.msrb.mxu1 %v1372_v26  ;;  %866 = vmatmul.bf16.vlgmr.msra.gmra.mxu3 %v1990_v31  ;;  %v1644_v26 = vor.u32 %v1825_v25, %v1643_v24  ;;  %v1841_v16 = vld [vmem:[#allocation4 + $0x2b8] sm:$0xf0]  ;;  %v1699_v24 = vld [vmem:[#allocation4 + $0x26c] sm:$0xf] }
  0xb1   :  { %879 = vmatmul.bf16.vlgmr.msrb.gmra.mxu0 %v1982_v49  ;;  %v160_v42 = vpop.f32.mrf.mxu3  ;;  %962 = vmatpush.bf16.msra.mxu3 %v1624_v35  ;;  %v1683_v35 = vld [vmem:[#allocation4 + $0x1ec] sm:$0xf]  ;;  %v1839_v25 = vld [vmem:[#allocation4 + $0x278] sm:$0xf0] }
  0xb2   :  { %905 = vmatmul.bf16.vlgmr.msra.gmra.mxu2 %v1984_v53  ;;  %927 = vmatpush.bf16.msra.mxu0 %v1288_v33  ;;  %v1684_v38 = vor.u32 %v1835_v37, %v1683_v35  ;;  %v1700_v27 = vor.u32 %v1839_v25, %v1699_v24 }
  0xb3   :  { %953 = vmatpush.bf16.msrb.mxu2 %v1480_v34  ;;  %v1635_v34 = vld [vmem:[#allocation4 + $0x6c] sm:$0xf] }
  0xb4   :  { %942 = vmatpush.bf16.msrb.mxu1 %v1360_v39  ;;  %v1636_v36 = vor.u32 %v1823_v22, %v1635_v34  ;;  %v1631_v39 = vld [vmem:[#allocation4 + $0x4c] sm:$0xf] }
  0xb5   :  { %963 = vmatpush.bf16.msra.mxu3 %v1612_v48  ;;  %v1632_v42 = vor.u32 %v1822_v40, %v1631_v39  ;;  %v1691_v39 = vld [vmem:[#allocation4 + $0x22c] sm:$0xf]  ;;  %v1837_v40 = vld [vmem:[#allocation4 + $0x238] sm:$0xf0] }
  0xb6   :  { %928 = vmatpush.bf16.msra.mxu0 %v1276_v45  ;;  %v1627_v45 = vld [vmem:[#allocation4 + $0x2c] sm:$0xf]  ;;  %v1692_v41 = vor.u32 %v1837_v40, %v1691_v39 }
  0xb7   :  { %954 = vmatpush.bf16.msrb.mxu2 %v1468_v46  ;;  %v1821_v46 = vld [vmem:[#allocation4 + $0x38] sm:$0xf0] }
  0xb8   :  { %943 = vmatpush.bf16.msrb.mxu1 %v1348_v54  ;;  %v1628_v48 = vor.u32 %v1821_v46, %v1627_v45  ;;  %v1671_v54 = vld [vmem:[#allocation4 + $0x18c] sm:$0xf] }
  0xb9   :  { %964 = vmatpush.bf16.msra.mxu3 %v1600_v60 }
  0xba   :  { %929 = vmatpush.bf16.msra.mxu0 %v1264_v57  ;;  %v1672_v57 = vor.u32 %v1832_v55, %v1671_v54 }
  0xbb   :  { %955 = vmatpush.bf16.msrb.mxu2 %v1456_v58  ;;  %944 = vmatmul.bf16.vlgmr.msrb.gmra.mxu1 %v1979_v32  ;;  %v1552_v32 = vor.u32 %v1802_v12, %v1551_v11  ;;  %v1844_v58 = vld [vmem:[#allocation4 + $0x318] sm:$0xf0]  ;;  %v2000_v11 = vld [vmem:[#allocation6 + $0x1] ss:$8 sm:$0x7] }
  0xbc   :  { %v1720_v59 = vor.u32 %v1844_v58, %v1719_v56  ;;  %v301_v17 = vperm.slane %v2000_v11, 0 }
  0xbd   :  { %965 = vmatpush.bf16.msra.mxu3 %v1588_v4  ;;  %v1663_v4 = vld [vmem:[#allocation4 + $0x14c] sm:$0xf] }
  0xbe   :  { %930 = vmatpush.bf16.msra.mxu0 %v1252_v2 }
  0xbf   :  { %956 = vmatpush.bf16.msrb.mxu2 %v1444_v3  ;;  %v1716_v3 = vor.u32 %v1843_v1, %v1715_v63 }
  0xc0   :  { %918 = vmatmul.bf16.vlgmr.msrb.gmra.mxu3 %v1990_v31 }
  0xc1   :  { %931 = vmatmul.bf16.vlgmr.msra.gmra.mxu0 %v1982_v49  ;;  %966 = vmatpush.bf16.msra.mxu3 %v1576_v7  ;;  %v1651_v49 = vld [vmem:[#allocation4 + $0xec] sm:$0xf]  ;;  %v1664_v7 = vor.u32 %v1830_v5, %v1663_v4 }
  0xc2   :  { %957 = vmatmul.bf16.vlgmr.msrb.gmra.mxu2 %v1984_v53  ;;  %1174 = vmatpush.bf16.msrb.mxu0 %v1656_v19  ;;  %v1652_v53 = vor.u32 %v1827_v20, %v1651_v49  ;;  %v1708_v49 = vor.u32 %v1841_v16, %v1707_v14  ;;  %v1703_v20 = vld [vmem:[#allocation4 + $0x28c] sm:$0xf] }
  0xc3   :  { %1200 = vmatpush.bf16.msra.mxu2 %v1720_v59 }
  0xc5   :  { %967 = vmatpush.bf16.msra.mxu3 %v1564_v10  ;;  %v1712_v10 = vor.u32 %v1842_v8, %v1711_v6 }
  0xc6   :  { %1175 = vmatpush.bf16.msrb.mxu0 %v1652_v53  ;;  %v1840_v53 = vld [vmem:[#allocation4 + $0x298] sm:$0xf0] }
  0xc7   :  { %1201 = vmatpush.bf16.msra.mxu2 %v1716_v3  ;;  %v1704_v21 = vor.u32 %v1840_v53, %v1703_v20 }
  0xc9   :  { %968 = vmatpush.bf16.msra.mxu3 %v1552_v32  ;;  %v1659_v32 = vld [vmem:[#allocation4 + $0x12c] sm:$0xf] }
  0xca   :  { %1176 = vmatpush.bf16.msrb.mxu0 %v1648_v18 }
  0xcb   :  { %1202 = vmatpush.bf16.msra.mxu2 %v1712_v10 }
  0xcd   :  { %969 = vmatpush.bf16.msra.mxu3 %v1540_v15  ;;  %v1660_v15 = vor.u32 %v1829_v13, %v1659_v32 }
  0xce   :  { %1177 = vmatpush.bf16.msrb.mxu0 %v1644_v26 }
  0xcf   :  { %1203 = vmatpush.bf16.msra.mxu2 %v1708_v49 }
  0xd0   :  { %970 = vmatmul.bf16.vlgmr.msra.gmra.mxu3 %v1990_v31  ;;  %v1836_v31 = vld [vmem:[#allocation4 + $0x218] sm:$0xf0] }
  0xd1   :  { %v1688_v33 = vor.u32 %v1836_v31, %v1687_v29  ;;  %v1695_v31 = vld [vmem:[#allocation4 + $0x24c] sm:$0xf] }
  0xd2   :  { %1178 = vmatpush.bf16.msrb.mxu0 %v1640_v30 }
  0xd3   :  { %1187 = vmatpush.bf16.msra.mxu1 %v1688_v33  ;;  %1204 = vmatpush.bf16.msra.mxu2 %v1704_v21  ;;  %v1838_v33 = vld [vmem:[#allocation4 + $0x258] sm:$0xf0] }
  0xd4   :  { %v1696_v22 = vor.u32 %v1838_v33, %v1695_v31 }
  0xd6   :  { %1179 = vmatpush.bf16.msrb.mxu0 %v1636_v36 }
  0xd7   :  { %1188 = vmatpush.bf16.msra.mxu1 %v1684_v38  ;;  %1205 = vmatpush.bf16.msra.mxu2 %v1700_v27 }
  0xda   :  { %1180 = vmatpush.bf16.msrb.mxu0 %v1632_v42  ;;  %v302_v42 = vperm.slane %v2000_v11, 1 }
  0xdb   :  { %1189 = vmatpush.bf16.msra.mxu1 %v1680_v44  ;;  %1206 = vmatpush.bf16.msra.mxu2 %v1696_v22 }
  0xde   :  { %1181 = vmatpush.bf16.msrb.mxu0 %v1628_v48 }
  0xdf   :  { %1190 = vmatpush.bf16.msra.mxu1 %v1676_v52  ;;  %1207 = vmatpush.bf16.msra.mxu2 %v1692_v41 }
  0xe3   :  { %1191 = vmatpush.bf16.msra.mxu1 %v1672_v57 }
  0xe7   :  { %1192 = vmatpush.bf16.msra.mxu1 %v1668_v0 }
  0xeb   :  { %1193 = vmatpush.bf16.msra.mxu1 %v1664_v7 }
  0xef   :  { %1194 = vmatpush.bf16.msra.mxu1 %v1660_v15 }
 0x118   :  { %v841_v51 = vpop.f32.mrf.mxu1 }
 0x11d   :  { %v828_v60 = vpop.f32.mrf.mxu0 }
 0x11e   :  { %v829_v23 = vadd.f32 %v828_v60, %v301_v17  ;;  %v303_v60 = vperm.slane %v2000_v11, 2 }
 0x120   :  { %v843_v2 = vpop.f32.mrf.mxu1  ;;  %v842_v28 = vadd.f32 %v841_v51, %v829_v23 }
 0x125   :  { %v854_v9 = vpop.f32.mrf.mxu2  ;;  %v830_v12 = vpop.f32.mrf.mxu0 }
 0x126   :  { %v855_v30 = vadd.f32 %v854_v9, %v842_v28  ;;  %v1029_v12 = vld [vmem:[#allocation6 + $0x2] ss:$0 sm:$0xff] }
 0x128   :  { %v893_v19 = vpop.f32.mrf.mxu1 }
 0x12d   :  { %v856_v18 = vpop.f32.mrf.mxu2 }
 0x12e   :  { %v880_v26 = vpop.f32.mrf.mxu0 }
 0x12f   :  { %v881_v46 = vadd.f32 %v880_v26, %v302_v42 }
 0x130   :  { %v895_v29 = vpop.f32.mrf.mxu1 }
 0x131   :  { %v894_v50 = vadd.f32 %v893_v19, %v881_v46 }
 0x133   :  { %v867_v34 = vpop.f32.mrf.mxu3 }
 0x134   :  { %v868_v35 = vadd.f32 %v867_v34, %v855_v30 }
 0x135   :  { %v906_v36 = vpop.f32.mrf.mxu2 }
 0x136   :  { %v975_v37 = vmax.f32 %v868_v35, 0.0  ;;  %v882_v38 = vpop.f32.mrf.mxu0  ;;  %v907_v52 = vadd.f32 %v906_v36, %v894_v50 }
 0x138   :  { %v1026_v43 = vpack.c.bf16 %v975_v37, %v975_v37  ;;  %v945_v44 = vpop.f32.mrf.mxu1 }
 0x13a   :  { %1182 = vmatmul.bf16.vlgmr.msrb.gmra.mxu0 %v1026_v43 }
 0x13b   :  { %v869_v45 = vpop.f32.mrf.mxu3 }
 0x13d   :  { %v908_v47 = vpop.f32.mrf.mxu2 }
 0x13e   :  { %v932_v48 = vpop.f32.mrf.mxu0 }
 0x13f   :  { %v933_v63 = vadd.f32 %v932_v48, %v303_v60 }
 0x140   :  { %v947_v51 = vpop.f32.mrf.mxu1 }
 0x141   :  { %v946_v0 = vadd.f32 %v945_v44, %v933_v63 }
 0x143   :  { %v919_v54 = vpop.f32.mrf.mxu3 }
 0x144   :  { %v920_v55 = vadd.f32 %v919_v54, %v907_v52 }
 0x145   :  { %v958_v56 = vpop.f32.mrf.mxu2 }
 0x146   :  { %v976_v57 = vmax.f32 %v920_v55, 0.0  ;;  %v934_v58 = vpop.f32.mrf.mxu0  ;;  %v959_v1 = vadd.f32 %v958_v56, %v946_v0 }
 0x148   :  { %v1027_v59 = vpack.c.bf16 %v976_v57, %v976_v57 }
 0x14a   :  { %1195 = vmatmul.bf16.vlgmr.msra.gmra.mxu1 %v1027_v59 }
 0x14b   :  { %v921_v61 = vpop.f32.mrf.mxu3 }
 0x14d   :  { %v960_v62 = vpop.f32.mrf.mxu2 }
 0x153   :  { %v971_v2 = vpop.f32.mrf.mxu3 }
 0x154   :  { %v972_v3 = vadd.f32 %v971_v2, %v959_v1 }
 0x156   :  { %v977_v4 = vmax.f32 %v972_v3, 0.0 }
 0x158   :  { %v1028_v5 = vpack.c.bf16 %v977_v4, %v977_v4 }
 0x15a   :  { %1208 = vmatmul.bf16.vlgmr.msra.gmra.mxu2 %v1028_v5 }
 0x15b   :  { %v973_v6 = vpop.f32.mrf.mxu3 }
 0x1b7   :  { %v1183_v7 = vpop.f32.mrf.mxu0 }
 0x1b8   :  { %v1184_v32 = vadd.f32 %v1183_v7, %v1029_v12 }
 0x1bf   :  { %v1185_v8 = vpop.f32.mrf.mxu0 }
 0x1c7   :  { %v1196_v9 = vpop.f32.mrf.mxu1 }
 0x1c8   :  { %v1197_v13 = vadd.f32 %v1196_v9, %v1184_v32 }
 0x1cf   :  { %v1198_v10 = vpop.f32.mrf.mxu1 }
 0x1dd   :  { %v1209_v11 = vpop.f32.mrf.mxu2 }
 0x1de   :  { %v1210_v14 = vadd.f32 %v1209_v11, %v1197_v13 }
 0x1e0   :  { %1851 = vtanh.f32 %v1210_v14 }
 0x1e5   :  { %v1211_v15 = vpop.f32.mrf.mxu2 }
 0x1e6   :  { %v1852_v16 = vpop.eup %1851 }
 0x1e7   :  { %1214 = vst [vmem:[%s2011_s3] sm:$0x3f] %v1852_v16 }
 0x1e8   :  { %1219 = vsyncpa [#allocation3], 1 }
 0x1e9   :  { %1220 = vsyncpa [#allocation5], 1 }

</bundles_post_ra>
